<compile_context>
chip_gen: v7x
topology: tpu7x:2x2x1
jax: 0.10.0
libtpu: 0.0.40
codegen_flags: <defaults>
</compile_context>

<pallas_src>
import jax
import jax.numpy as jnp
from jax.experimental import pallas as pl
from jax.experimental.pallas import tpu as pltpu

_LANE = 128


def _round_up(v: int, m: int) -> int:
    return ((v + m - 1) // m) * m


def _vmem_budget_bytes() -> int:
    """Generation-aware budget for the pipelined VMEM working set."""
    try:
        cap = getattr(pltpu.get_tpu_info(), "vmem_capacity_bytes", None)
    except Exception:  # interpret mode / no hw query available
        cap = None
    if not cap:
        cap = 64 * 1024 * 1024  # conservative: assume v7x-class 64 MiB VMEM
    # ~75% of physical, capped at 96 MiB  ->  ~48 MiB on v7x, 96 MiB on v5e/v6e.
    return min(int(cap) * 3 // 4, 96 * 1024 * 1024)


# ---------------------------------------------------------------------------
# Kernels
# ---------------------------------------------------------------------------
def _linear_kernel_single(x_ref, w_ref, b_ref, o_ref):
    """Single K step: no accumulator scratch, no k==0/k==last branches."""
    acc = jnp.dot(x_ref[...], w_ref[...], preferred_element_type=jnp.float32)
    o_ref[...] = (acc + b_ref[...].astype(jnp.float32)).astype(o_ref.dtype)


def _linear_kernel_acc(x_ref, w_ref, b_ref, o_ref, acc_ref):
    """Strip-mined K: f32 VMEM accumulator, bias folded into the init."""
    k = pl.program_id(2)

    @pl.when(k == 0)
    def _init():
        acc_ref[...] = jnp.broadcast_to(
            b_ref[...].astype(jnp.float32), acc_ref.shape
        )

    acc_ref[...] += jnp.dot(
        x_ref[...], w_ref[...], preferred_element_type=jnp.float32
    )

    @pl.when(k == pl.num_programs(2) - 1)
    def _finalize():
        o_ref[...] = acc_ref[...].astype(o_ref.dtype)


# ---------------------------------------------------------------------------
# Tile selection
# ---------------------------------------------------------------------------
def _select_tiles(batch, in_features, out_features, in_itemsize, out_itemsize,
                  budget, tm_max, tn_max, tk_max):
    # Dtype-aware sublane packing granularity for the M tile.
    sub = {4: 8, 2: 16, 1: 32}.get(in_itemsize, 8)

    tm = min(tm_max, _round_up(batch, sub))
    if out_features <= _LANE:
        tn = out_features                      # equal-to-dim block (legal)
    else:
        tn = min(tn_max, _round_up(out_features, _LANE))

    k_aligned = _round_up(in_features, _LANE)
    if k_aligned <= tk_max:
        tk = k_aligned                         # collapse K to a single step
    else:
        tk = max(_LANE, (min(tk_max, 1024) // _LANE) * _LANE)

    # v7x has 2 TensorCores sharding the "parallel" axes: keep >=2 blocks along
    # M or N when the problem allows it (small-batch Linear otherwise idles a
    # core).
    if (pl.cdiv(batch, tm) == 1 and pl.cdiv(out_features, tn) == 1
            and out_features > _LANE):
        tn = _round_up(pl.cdiv(out_features, 2), _LANE)

    def footprint(tm_, tn_, tk_):
        n_ksteps = pl.cdiv(in_features, tk_)
        ws = 2 * (tm_ * tk_ + tk_ * tn_ + tn_) * in_itemsize  # dbl-buffered in
        ws += 2 * tm_ * tn_ * out_itemsize                    # dbl-buffered out
        if n_ksteps > 1:
            ws += tm_ * tn_ * 4                               # f32 accumulator
        return ws

    # Shrink (K first, then N, then M) until the working set fits the budget.
    while footprint(tm, tn, tk) > budget:
        if tk > _LANE:
            tk = max(_LANE, _round_up(tk // 2, _LANE))
        elif tn > _LANE:
            tn = max(_LANE, _round_up(tn // 2, _LANE))
        elif tm > sub:
            tm = max(sub, _round_up(tm // 2, sub))
        else:
            break
    return tm, tn, tk


# ---------------------------------------------------------------------------
# Forward
# ---------------------------------------------------------------------------
def linear_forward(x, w, bias, *, tm_max=512, tn_max=512, tk_max=2048,
                   allow_bf16=False):
    """y = x @ w + bias  as a tiled Pallas TPU matmul.

    x    : (batch, in_features) or (in_features,)
    w    : (in_features, out_features)
    bias : (out_features,) or (1, out_features)
    returns (batch, out_features)  (2-D, matching the numpy reference).
    """
    if x.ndim == 1:
        x = x.reshape((1, x.shape[0]))
    if bias.ndim == 1:
        bias = bias.reshape((1, bias.shape[0]))

    batch, in_features = x.shape
    out_features = w.shape[1]
    out_dtype = jnp.result_type(x.dtype, w.dtype)

    # Optional low-precision MXU-input fast path (accumulation stays f32).
    if allow_bf16 and x.dtype == jnp.float32 and w.dtype == jnp.float32:
        x = x.astype(jnp.bfloat16)
        w = w.astype(jnp.bfloat16)

    in_itemsize = x.dtype.itemsize
    out_itemsize = jnp.dtype(out_dtype).itemsize
    budget = _vmem_budget_bytes()

    tm, tn, tk = _select_tiles(batch, in_features, out_features,
                               in_itemsize, out_itemsize, budget,
                               tm_max, tn_max, tk_max)

    # Only K is zero-padded (zero rows/cols contribute nothing to the
    # contraction).  M/N are handled with cdiv grids + masked edge blocks:
    # OOB reads there only feed rows/cols whose output writes are dropped.
    grid_k = pl.cdiv(in_features, tk)
    k_pad = grid_k * tk
    x_p = x if k_pad == in_features else jnp.pad(
        x, ((0, 0), (0, k_pad - in_features)))
    w_p = w if k_pad == in_features else jnp.pad(
        w, ((0, k_pad - in_features), (0, 0)))

    grid_m = pl.cdiv(batch, tm)
    grid_n = pl.cdiv(out_features, tn)

    if grid_k == 1:
        kernel = _linear_kernel_single
        grid = (grid_m, grid_n)
        in_specs = [
            pl.BlockSpec((tm, tk), lambda i, j: (i, 0)),
            pl.BlockSpec((tk, tn), lambda i, j: (0, j)),
            pl.BlockSpec((1, tn), lambda i, j: (0, j)),
        ]
        out_specs = pl.BlockSpec((tm, tn), lambda i, j: (i, j))
        scratch_shapes = []
        dim_sem = ("parallel", "parallel")
    else:
        kernel = _linear_kernel_acc
        grid = (grid_m, grid_n, grid_k)
        in_specs = [
            pl.BlockSpec((tm, tk), lambda i, j, k: (i, k)),
            pl.BlockSpec((tk, tn), lambda i, j, k: (k, j)),
            pl.BlockSpec((1, tn), lambda i, j, k: (0, j)),
        ]
        out_specs = pl.BlockSpec((tm, tn), lambda i, j, k: (i, j))
        scratch_shapes = [pltpu.VMEM((tm, tn), jnp.float32)]
        dim_sem = ("parallel", "parallel", "arbitrary")

    # Advisory cost estimate including per-strip tile re-reads.
    bytes_accessed = (
        batch * k_pad * in_itemsize * grid_n          # x re-read per N strip
        + k_pad * out_features * in_itemsize * grid_m  # w re-read per M strip
        + out_features * bias.dtype.itemsize * grid_m  # bias
        + batch * out_features * out_itemsize)         # output written once

    out = pl.pallas_call(
        kernel,
        out_shape=jax.ShapeDtypeStruct((batch, out_features), out_dtype),
        grid_spec=pltpu.PrefetchScalarGridSpec(
            num_scalar_prefetch=0,
            grid=grid,
            in_specs=in_specs,
            out_specs=out_specs,
            scratch_shapes=scratch_shapes,
        ),
        compiler_params=pltpu.CompilerParams(
            dimension_semantics=dim_sem,
            vmem_limit_bytes=int(budget),
        ),
        cost_estimate=pl.CostEstimate(
            flops=2 * batch * out_features * in_features,
            transcendentals=0,
            bytes_accessed=int(bytes_accessed),
        ),
    )(x_p, w_p, bias)

    return out


def linear_forward_aug(x, weights_aug, **kwargs):
    """Compatibility wrapper for the module's augmented-weight layout:
    weights_aug[(in_features+1, out_features)], row 0 = bias, rows 1: = W."""
    bias = weights_aug[0:1, :]
    w = weights_aug[1:, :]
    return linear_forward(x, w, bias, **kwargs)


if __name__ == "__main__":
    key = jax.random.PRNGKey(0)
    k_w, k_x, k_w2, k_x2 = jax.random.split(key, 4)

    # --- Test 1: module-sized small case (mirrors the numpy reference) -----
    in_features, out_features, batch = 32, 16, 8
    weights_aug = jax.random.uniform(
        k_w, (in_features + 1, out_features),
        minval=-0.3, maxval=0.3, dtype=jnp.float32)
    x = jax.random.normal(k_x, (batch, in_features), dtype=jnp.float32)

    y = jax.block_until_ready(linear_forward_aug(x, weights_aug))
    x_aug = jnp.concatenate([jnp.ones((batch, 1), jnp.float32), x], axis=1)
    y_ref = x_aug @ weights_aug
    assert y.shape == (batch, out_features)
    assert jnp.allclose(y, y_ref, atol=1e-4, rtol=1e-4)

    # --- Test 2: 1-D input path (reference returns 2-D (1, out)) -----------
    x1 = jax.random.normal(k_x2, (in_features,), dtype=jnp.float32)
    y1 = jax.block_until_ready(linear_forward_aug(x1, weights_aug))
    y1_ref = jnp.concatenate(
        [jnp.ones((1, 1), jnp.float32), x1.reshape(1, -1)], axis=1) @ weights_aug
    assert y1.shape == (1, out_features)
    assert jnp.allclose(y1, y1_ref, atol=1e-4, rtol=1e-4)

    # --- Test 3: unaligned shapes → masked edge tiles, 2 parallel N blocks -
    b2, in2, out2 = 300, 384, 200
    w_aug2 = jax.random.uniform(
        k_w2, (in2 + 1, out2), minval=-0.3, maxval=0.3, dtype=jnp.float32)
    x2 = jax.random.normal(k_x, (b2, in2), dtype=jnp.float32)
    y2 = jax.block_until_ready(linear_forward_aug(x2, w_aug2))
    x2_aug = jnp.concatenate([jnp.ones((b2, 1), jnp.float32), x2], axis=1)
    y2_ref = x2_aug @ w_aug2
    assert y2.shape == (b2, out2)
    assert jnp.allclose(y2, y2_ref, atol=1e-4, rtol=1e-4)

    # --- Test 4: force the strip-mined K / accumulator path (3 K steps) ----
    y3 = jax.block_until_ready(linear_forward_aug(x2, w_aug2, tk_max=128))
    assert jnp.allclose(y3, y2_ref, atol=1e-4, rtol=1e-4)

    # --- Test 5: optional bf16 MXU-input fast path (looser tolerance) ------
    y4 = jax.block_until_ready(linear_forward_aug(x2, w_aug2, allow_bf16=True))
    assert y4.dtype == y2_ref.dtype
    assert jnp.allclose(y4, y2_ref, atol=1e-1, rtol=5e-2)

    print("KERNEL_OK")
</pallas_src>

<mosaic_0001>
module attributes {stable_mosaic.version = 11 : i64} {
  func.func @_linear_kernel_single(%arg0: i32, %arg1: i32, %arg2: memref<8x128xf32, #tpu.memory_space<vmem>>, %arg3: memref<128x16xf32, #tpu.memory_space<vmem>>, %arg4: memref<1x16xf32, #tpu.memory_space<vmem>>, %arg5: memref<8x16xf32, #tpu.memory_space<vmem>>) attributes {dimension_semantics = [#tpu.dimension_semantics<parallel>, #tpu.dimension_semantics<parallel>], iteration_bounds = array<i64: 1, 1>, scalar_prefetch = 0 : i64, scratch_operands = 0 : i64, tpu.core_type = #tpu.core_type<tc>, window_params = [{transform_indices = @transform_0, window_bounds = array<i64: 8, 128>}, {transform_indices = @transform_1, window_bounds = array<i64: 128, 16>}, {transform_indices = @transform_2, window_bounds = array<i64: 1, 16>}, {transform_indices = @transform_3, window_bounds = array<i64: 8, 16>}]} {
    %c0 = arith.constant 0 : index
    %c0_0 = arith.constant 0 : index
    %0 = vector.load %arg2[%c0, %c0_0] : memref<8x128xf32, #tpu.memory_space<vmem>>, vector<8x128xf32>
    %c0_1 = arith.constant 0 : index
    %c0_2 = arith.constant 0 : index
    %1 = vector.load %arg3[%c0_1, %c0_2] : memref<128x16xf32, #tpu.memory_space<vmem>>, vector<128x16xf32>
    %cst = arith.constant dense<0.000000e+00> : vector<8x16xf32>
    %2 = tpu.matmul %0, %1, %cst {dimension_numbers = #tpu.dot_dimension_numbers<[1], [0], [0], [1], [0, 0, 1, 1], [], []>} : vector<8x128xf32>, vector<128x16xf32>, vector<8x16xf32> -> vector<8x16xf32>
    %c0_3 = arith.constant 0 : index
    %c0_4 = arith.constant 0 : index
    %3 = vector.load %arg4[%c0_3, %c0_4] : memref<1x16xf32, #tpu.memory_space<vmem>>, vector<1x16xf32>
    %4 = vector.broadcast %3 : vector<1x16xf32> to vector<8x16xf32>
    %5 = arith.addf %2, %4 : vector<8x16xf32>
    %c0_5 = arith.constant 0 : index
    %c0_6 = arith.constant 0 : index
    %6 = vector.load %arg5[%c0_5, %c0_6] : memref<8x16xf32, #tpu.memory_space<vmem>>, vector<8x16xf32>
    tpu.vector_store %arg5[%c0_5, %c0_6], %5 {strides = array<i32>} : memref<8x16xf32, #tpu.memory_space<vmem>>, vector<8x16xf32>,
    return
  }
  func.func @transform_0(%arg0: i32, %arg1: i32) -> (i32, i32) {
    %c0_i32 = arith.constant 0 : i32
    %c0_i32_0 = arith.constant 0 : i32
    return %arg0, %c0_i32 : i32, i32
  }
  func.func @transform_1(%arg0: i32, %arg1: i32) -> (i32, i32) {
    %c0_i32 = arith.constant 0 : i32
    %c0_i32_0 = arith.constant 0 : i32
    return %c0_i32, %arg1 : i32, i32
  }
  func.func @transform_2(%arg0: i32, %arg1: i32) -> (i32, i32) {
    %c0_i32 = arith.constant 0 : i32
    %c0_i32_0 = arith.constant 0 : i32
    return %c0_i32, %arg1 : i32, i32
  }
  func.func @transform_3(%arg0: i32, %arg1: i32) -> (i32, i32) {
    %c0_i32 = arith.constant 0 : i32
    return %arg0, %arg1 : i32, i32
  }
}

</mosaic_0001>

<bundles_post_ra>
// kernel: tpu_custom_call.1
= control target key start
LH: loop header
LB: loop body
LE: loop exit
PB: predicated region body
PF: predicated region fallthrough
CT: control target
= control target key end

     0   :  { %v230_v3 = vmov 0.0|0.0   ;;  %vm231_vm0 = vmmov 0   ;;  %v232_v6 = vmov 0.0   ;;  %s320_s0 = inlined_call_operand.vmem [shape: f32[8,128], index: 0, kind: input, shape index: {}]   ;;  %s321_s1 = inlined_call_operand.vmem [shape: f32[128,16], index: 1, kind: input, shape index: {}]   ;;  %s322_s2 = inlined_call_operand.vmem [shape: f32[1,16], index: 2, kind: input, shape index: {}]   ;;  %s323_s3 = inlined_call_operand.hbm [shape: f32[8,16], index: 3, kind: output, shape index: {}]  }
   0x1   :  { %v16_v0 = vld [vmem:[%s321_s1] sm:$0xff]  ;;  %v17_v1 = vld [vmem:[%s321_s1 + $0x8] sm:$0xff]  ;;  %v18_v2 = vld [vmem:[%s321_s1 + $0x10] sm:$0xff]  ;;  %178 = vmatprep.subr.bf16.mxu0 %v230_v3  ;;  %175 = vmatprep.mubr.msk.f32.mxu0 %vm231_vm0, %v232_v6 }
   0x2   :  { %v179_v4 = vpack.c.bf16 %v17_v1, %v16_v0  ;;  %v19_v5 = vld [vmem:[%s321_s1 + $0x18] sm:$0xff]  ;;  %v20_v8 = vld [vmem:[%s321_s1 + $0x20] sm:$0xff]  ;;  %v21_v9 = vld [vmem:[%s321_s1 + $0x28] sm:$0xff] }
   0x3   :  { %v182_v7 = vpack.c.bf16 %v19_v5, %v18_v2 }
   0x4   :  { %180 = vmatpush3.bf16.msra.mxu0 %v179_v4 }
   0x5   :  { %181 = vmatprep.subr.bf16.mxu0 %v230_v3 }
   0x6   :  { %8 = vsyncpa [#allocation3], 0  ;;  %v185_v10 = vpack.c.bf16 %v21_v9, %v20_v8  ;;  %v22_v11 = vld [vmem:[%s321_s1 + $0x30] sm:$0xff]  ;;  %v23_v12 = vld [vmem:[%s321_s1 + $0x38] sm:$0xff]  ;;  %s233_s21 = smov [#allocation2]   ;;  %vm109_vm1 = vcmask 130048  }
   0x7   :  { %v188_v13 = vpack.c.bf16 %v23_v12, %v22_v11  ;;  %v24_v14 = vld [vmem:[%s321_s1 + $0x40] sm:$0xff]  ;;  %v25_v15 = vld [vmem:[%s321_s1 + $0x48] sm:$0xff]  ;;  %v26_v17 = vld [vmem:[%s321_s1 + $0x50] sm:$0xff]  ;;  %s117_s22 = sshll.u32 %s233_s21, 4  ;;  %s118_s22 = int_to_ptr.vmem [resolvable:$true] %s117_s22 }
   0x8   :  { %183 = vmatpush3.bf16.msra.mxu0 %v182_v7  ;;  %v191_v16 = vpack.c.bf16 %v25_v15, %v24_v14  ;;  %v27_v18 = vld [vmem:[%s321_s1 + $0x58] sm:$0xff]  ;;  %v28_v20 = vld [vmem:[%s321_s1 + $0x60] sm:$0xff]  ;;  %v29_v21 = vld [vmem:[%s321_s1 + $0x68] sm:$0xff]  ;;  %p211_p1 = scmp.lt.s32.totalorder %s118_s22, %s118_s22 }
   0x9   :  { %184 = vmatprep.subr.bf16.mxu0 %v230_v3  ;;  %v194_v19 = vpack.c.bf16 %v27_v18, %v26_v17  ;;  %v197_v22 = vpack.c.bf16 %v29_v21, %v28_v20  ;;  %v30_v23 = vld [vmem:[%s321_s1 + $0x70] sm:$0xff]  ;;  %v31_v24 = vld [vmem:[%s321_s1 + $0x78] sm:$0xff]  ;;  %v15_v26 = vld [vmem:[%s320_s0] sm:$0xff]  ;;  %s206_s1 = scalar_lea.vmem %s118_s22, 128 }
   0xa   :  { %v200_v25 = vpack.c.bf16 %v31_v24, %v30_v23  ;;  %v125_v27 = vld [vmem:[%s322_s2] ss:$0 sm:$0xff]  ;;  %p207_p0 = scmp.ne.s32.totalorder %s118_s22, %s206_s1  ;;  %p212_p2 = scmp.lt.s32.totalorder %s206_s1, %s206_s1 }
   0xc   :  { %186 = vmatpush3.bf16.msra.mxu0 %v185_v10  ;;  %p213_p3 = por %p212_p2, %p211_p1 }
   0xd   :  { %187 = vmatprep.subr.bf16.mxu0 %v230_v3 }
   0xe   :  { %p214_p4 = pnand %p213_p3, %p207_p0 }
  0x10   :  { %189 = vmatpush3.bf16.msra.mxu0 %v188_v13 }
  0x11   :  { %190 = vmatprep.subr.bf16.mxu0 %v230_v3 }
  0x14   :  { %192 = vmatpush3.bf16.msra.mxu0 %v191_v16 }
  0x15   :  { %193 = vmatprep.subr.bf16.mxu0 %v230_v3 }
  0x18   :  { %195 = vmatpush3.bf16.msra.mxu0 %v194_v19 }
  0x19   :  { %196 = vmatprep.subr.bf16.mxu0 %v230_v3 }
  0x1c   :  { %198 = vmatpush3.bf16.msra.mxu0 %v197_v22 }
  0x1d   :  { %199 = vmatprep.subr.bf16.mxu0 %v230_v3 }
  0x20   :  { %201 = vmatpush3.bf16.msra.mxu0 %v200_v25 }
  0x23   :  { %176 = vmatmul.mubr.f32.vlgmr.msra.gmra.mrb[0].mxu0 %v15_v26 }
  0xf6   :  { %v105_v28 = vpop.f32.mrb[0].mxu0 }
  0xf7   :  { %v106_v29 = vadd.f32 %v125_v27, %v105_v28  ;;  %v177_v30 = vpop.f32.mrb[1].mxu0 }
  0xf9   :  { %110 = vst.msk [vmem:[#allocation2] sm:$0xff] %vm109_vm1, %v106_v29 }
  0xfa   :  { %217 = shalt.err (!%p214_p4)
}
  0xfb   :  { %s218_s24 = scalar_lea.hbm %s323_s3, 128 }
  0xfc   :  { %p219_p5 = scmp.ne.s32.totalorder %s323_s3, %s218_s24  ;;  %p222_p6 = scmp.lt.u32.totalorder %s218_s24, %s323_s3 }
  0xfe   :  { %p224_p7 = pnand %p222_p6, %p219_p5 }
 0x100   :  { %227 = shalt.err (!%p224_p7)
}
 0x101   :  { %120 = dma.vmem_to_hbm [thread:$0]  %s118_s22, 128, %s323_s3, [#allocation3]  }
 0x102   :  { %228 = dma.done.wait [#allocation3], 128  }
 0x103   :  { %229 = vsyncadd [#allocation3], 4294967168 }
 0x104   :  { %124 = vsyncpa [#allocation3], 1 }

</bundles_post_ra>
